<compile_context>
chip_gen: v6e
topology: v6e:2x2x1
jax: 0.10.0
libtpu: 0.0.40
codegen_flags: <defaults>
</compile_context>

<pallas_src>
import functools

import jax
import jax.numpy as jnp
import numpy as np
from jax.experimental import pallas as pl
from jax.experimental.pallas import tpu as pltpu


def _gat_fused_kernel(h_ref, wfc_ref, asrc_ref, adst_ref, awbd_ref,
                      wedge_ref, bias_ref, out_ref,
                      *, num_heads, dout, n_src, dst_tile, n_tiles):
    f32 = jnp.float32

    # ---- fused projection: one lane-dense MXU matmul for all heads -------------------
    z_all = jnp.dot(h_ref[...], wfc_ref[...], preferred_element_type=f32)      # (N, H*Dout)

    # ---- per-node attention contributions for all heads (block-diag weights) ---------
    zs = jnp.dot(z_all, asrc_ref[...], preferred_element_type=f32)             # (N, H)
    zs_rows = zs.T                                                              # (H, N) one transpose total

    if n_tiles == 1:
        z_dst = z_all                                                           # dst tile == all nodes
    else:
        row0 = pl.multiple_of(pl.program_id(0) * dst_tile, dst_tile)
        h_dst = h_ref[pl.ds(row0, dst_tile), :]                                 # (T_dst, Din)
        z_dst = jnp.dot(h_dst, wfc_ref[...], preferred_element_type=f32)        # (T_dst, H*Dout)
    zd = jnp.dot(z_dst, adst_ref[...], preferred_element_type=f32)              # (T_dst, H)

    # ---- edge-feature logits for ALL heads in one MXU matmul -------------------------
    #   ew_big[i, h*N + j] = <a_w[h], w_edge[i, j, :]>
    ew_big = jnp.dot(wedge_ref[...], awbd_ref[...], preferred_element_type=f32)  # (T_dst, H*N)

    bias = bias_ref[...]                                                        # (T_dst, N) additive mask

    head_outs = []
    for hd in range(num_heads):            # static unroll; heads share the same bundles
        ew = ew_big[:, hd * n_src:(hd + 1) * n_src]                             # (T_dst, N)
        logits = ew + zd[:, hd:hd + 1] + zs_rows[hd:hd + 1, :]
        e = jnp.where(logits >= 0, logits, f32(0.01) * logits)                  # leaky_relu
        masked = e + bias                                                       # single mask pass
        m = jnp.max(masked, axis=1, keepdims=True)
        p = jnp.exp(masked - m)
        denom = jnp.maximum(jnp.sum(p, axis=1, keepdims=True), f32(1e-30))      # guard deg-0 rows
        alpha = p * pl.reciprocal(denom, approx=True)                           # EUP (free slot)
        zh = z_all[:, hd * dout:(hd + 1) * dout]                                # (N, Dout)
        head_outs.append(jnp.dot(alpha, zh, preferred_element_type=f32))        # (T_dst, Dout)

    # one lane-dense (T_dst, H*Dout) store
    out_ref[...] = jnp.concatenate(head_outs, axis=1)


def multi_head_gat(h, wfc, a_src, a_dst, a_w, w_edge, adj, *, dst_tile=None):
    """Fused multi-head GAT forward (merge='mean').

    h      : (N, Din)      node features
    wfc    : (H, Din, Dout) per-head fc weight, pre-transposed so z = h @ wfc[h]
    a_src  : (H, Dout)     attn_fc weight slice for src z
    a_dst  : (H, Dout)     attn_fc weight slice for dst z
    a_w    : (H, E)        attn_fc weight slice for edge features
    w_edge : (N, N, E)     dense edge features, [dst, src, :]
    adj    : (N, N)        {0,1} dense adjacency mask, adj[dst, src]
    returns (N, Dout) — mean over heads.
    """
    f32 = jnp.float32
    H, Din, Dout = wfc.shape
    N = h.shape[0]
    E = w_edge.shape[-1]
    HD = H * Dout

    if dst_tile is None:
        dst_tile = N if N <= 256 else 128
    assert N % dst_tile == 0 and (dst_tile == N or dst_tile % 8 == 0)
    n_tiles = N // dst_tile

    # ---- weight / layout preprocessing (pure packing, done once per call) ------------
    # fused projection weight: (Din, H*Dout)
    wfc_all = jnp.transpose(wfc.astype(f32), (1, 0, 2)).reshape(Din, HD)
    # block-diagonal attention weights: (H*Dout, H), column h only sees head h's z block
    eye_h = jnp.eye(H, dtype=f32)
    a_src_bd = (a_src.astype(f32)[:, :, None] * eye_h[:, None, :]).reshape(HD, H)
    a_dst_bd = (a_dst.astype(f32)[:, :, None] * eye_h[:, None, :]).reshape(HD, H)
    # per-src-node block-diagonal edge-attention weight: awbd[j*E+k, h*N+j] = a_w[h, k]
    eye_n = jnp.eye(N, dtype=f32)
    awbd = jnp.einsum('hk,jm->jkhm', a_w.astype(f32), eye_n).reshape(N * E, H * N)
    # dst-major flattened edge features: (N, N*E), row i = [w_edge[i,0,:], w_edge[i,1,:], ...]
    w_edge_flat = w_edge.astype(f32).reshape(N, N * E)
    # additive adjacency bias (single in-kernel mask application)
    adj_bias = jnp.where(adj > 0, 0.0, -1e30).astype(f32)

    kernel = functools.partial(
        _gat_fused_kernel, num_heads=H, dout=Dout, n_src=N,
        dst_tile=dst_tile, n_tiles=n_tiles)

    out_cat = pl.pallas_call(
        kernel,
        out_shape=jax.ShapeDtypeStruct((N, HD), f32),
        grid=(n_tiles,),
        in_specs=[
            pl.BlockSpec((N, Din), lambda t: (0, 0)),            # h (all nodes, resident)
            pl.BlockSpec((Din, HD), lambda t: (0, 0)),           # fused fc weight
            pl.BlockSpec((HD, H), lambda t: (0, 0)),             # block-diag a_src
            pl.BlockSpec((HD, H), lambda t: (0, 0)),             # block-diag a_dst
            pl.BlockSpec((N * E, H * N), lambda t: (0, 0)),      # block-diag a_w
            pl.BlockSpec((dst_tile, N * E), lambda t: (t, 0)),   # edge features (dst tile)
            pl.BlockSpec((dst_tile, N), lambda t: (t, 0)),       # additive adjacency bias
        ],
        out_specs=pl.BlockSpec((dst_tile, HD), lambda t: (t, 0)),
        compiler_params=pltpu.CompilerParams(
            dimension_semantics=("parallel",),                   # dst tiles are independent
            vmem_limit_bytes=32 * 1024 * 1024),
    )(h.astype(f32), wfc_all, a_src_bd, a_dst_bd, awbd, w_edge_flat, adj_bias)

    # merge='mean' over heads: tiny XLA reduce on the lane-dense kernel output
    return out_cat.reshape(N, H, Dout).mean(axis=1)


def reference(h, wfc, a_src, a_dst, a_w, w_edge, adj):
    """Pure-JAX reference replicating the PyTorch/DGL semantics (dense form)."""
    outs = []
    H = wfc.shape[0]
    for hi in range(H):
        z = h @ wfc[hi]                                     # (N, Dout)
        zs = z @ a_src[hi][:, None]                         # (N, 1)
        zd = z @ a_dst[hi][:, None]                         # (N, 1)
        ew = jnp.einsum("ijk,k->ij", w_edge, a_w[hi])       # (N, N)
        logits = ew + zd + zs.T
        e = jnp.where(logits >= 0, logits, 0.01 * logits)
        masked = jnp.where(adj > 0, e, -1e30)
        m = jnp.max(masked, axis=1, keepdims=True)
        p = jnp.exp(masked - m) * adj
        alpha = p / jnp.sum(p, axis=1, keepdims=True)
        outs.append(alpha @ z)
    return jnp.mean(jnp.stack(outs), axis=0)


if __name__ == "__main__":
    # small, module-consistent shapes
    N = 16          # number of graph nodes
    IN_DIM = 32
    OUT_DIM = 32
    EDGE_DIM = 16
    NUM_HEADS = 4

    key = jax.random.PRNGKey(0)
    k_h, k_w, k_fc, k_att, k_adj = jax.random.split(key, 5)

    # node features and dense edge features w_edge[dst, src, :]
    h = jax.random.normal(k_h, (N, IN_DIM), dtype=jnp.float32)
    w_edge = jax.random.normal(k_w, (N, N, EDGE_DIM), dtype=jnp.float32)

    # dense adjacency mask (self-loops guaranteed so every node has >=1 in-edge)
    adj = jax.random.bernoulli(k_adj, 0.5, (N, N)).astype(jnp.float32)
    adj = jnp.maximum(adj, jnp.eye(N, dtype=jnp.float32))

    # per-head parameters (deterministic init mimicking nn.Linear uniform bounds)
    fc_bound = 1.0 / np.sqrt(IN_DIM)
    att_bound = 1.0 / np.sqrt(2 * OUT_DIM + EDGE_DIM)
    # fc weight stored pre-transposed: (H, in_dim, out_dim) so z = h @ wfc[h]
    wfc = jax.random.uniform(k_fc, (NUM_HEADS, IN_DIM, OUT_DIM),
                             minval=-fc_bound, maxval=fc_bound, dtype=jnp.float32)
    # attn_fc weight (1, 2*out_dim + edge_dim) split by the cat order [src_z, dst_z, w]
    attn_w = jax.random.uniform(k_att, (NUM_HEADS, 2 * OUT_DIM + EDGE_DIM),
                                minval=-att_bound, maxval=att_bound, dtype=jnp.float32)
    a_src = attn_w[:, :OUT_DIM]                 # (H, Dout)
    a_dst = attn_w[:, OUT_DIM:2 * OUT_DIM]      # (H, Dout)
    a_w = attn_w[:, 2 * OUT_DIM:]               # (H, E)

    out = multi_head_gat(h, wfc, a_src, a_dst, a_w, w_edge, adj)
    out = jax.block_until_ready(out)

    ref = jax.block_until_ready(reference(h, wfc, a_src, a_dst, a_w, w_edge, adj))
    # tolerance slack covers the EUP approximate reciprocal in the softmax normalization;
    # structural errors (wrong mask / head mixing / cat order) are orders of magnitude larger.
    np.testing.assert_allclose(np.asarray(out), np.asarray(ref), rtol=5e-3, atol=5e-3)

    print("KERNEL_OK")
</pallas_src>

<mosaic_0001>
module attributes {stable_mosaic.version = 11 : i64} {
  func.func @_gat_fused_kernel(%arg0: i32, %arg1: memref<16x32xf32, #tpu.memory_space<vmem>>, %arg2: memref<32x128xf32, #tpu.memory_space<vmem>>, %arg3: memref<128x4xf32, #tpu.memory_space<vmem>>, %arg4: memref<128x4xf32, #tpu.memory_space<vmem>>, %arg5: memref<256x64xf32, #tpu.memory_space<vmem>>, %arg6: memref<16x256xf32, #tpu.memory_space<vmem>>, %arg7: memref<16x16xf32, #tpu.memory_space<vmem>>, %arg8: memref<16x128xf32, #tpu.memory_space<vmem>>) attributes {dimension_semantics = [#tpu.dimension_semantics<parallel>], iteration_bounds = array<i64: 1>, scalar_prefetch = 0 : i64, scratch_operands = 0 : i64, tpu.core_type = #tpu.core_type<tc>, window_params = [{pipeline_mode = #tpu.pipeline_mode<synchronous>, transform_indices = @transform_0, window_bounds = array<i64: 16, 32>}, {pipeline_mode = #tpu.pipeline_mode<synchronous>, transform_indices = @transform_1, window_bounds = array<i64: 32, 128>}, {pipeline_mode = #tpu.pipeline_mode<synchronous>, transform_indices = @transform_2, window_bounds = array<i64: 128, 4>}, {pipeline_mode = #tpu.pipeline_mode<synchronous>, transform_indices = @transform_3, window_bounds = array<i64: 128, 4>}, {pipeline_mode = #tpu.pipeline_mode<synchronous>, transform_indices = @transform_4, window_bounds = array<i64: 256, 64>}, {transform_indices = @transform_5, window_bounds = array<i64: 16, 256>}, {transform_indices = @transform_6, window_bounds = array<i64: 16, 16>}, {transform_indices = @transform_7, window_bounds = array<i64: 16, 128>}]} {
    %c0 = arith.constant 0 : index
    %c0_0 = arith.constant 0 : index
    %0 = vector.load %arg1[%c0, %c0_0] : memref<16x32xf32, #tpu.memory_space<vmem>>, vector<16x32xf32>
    %c0_1 = arith.constant 0 : index
    %c0_2 = arith.constant 0 : index
    %1 = vector.load %arg2[%c0_1, %c0_2] : memref<32x128xf32, #tpu.memory_space<vmem>>, vector<32x128xf32>
    %cst = arith.constant dense<0.000000e+00> : vector<16x128xf32>
    %2 = tpu.matmul %0, %1, %cst {dimension_numbers = #tpu.dot_dimension_numbers<[1], [0], [0], [1], [0, 0, 1, 1], [], []>} : vector<16x32xf32>, vector<32x128xf32>, vector<16x128xf32> -> vector<16x128xf32>
    %c0_3 = arith.constant 0 : index
    %c0_4 = arith.constant 0 : index
    %3 = vector.load %arg3[%c0_3, %c0_4] : memref<128x4xf32, #tpu.memory_space<vmem>>, vector<128x4xf32>
    %cst_5 = arith.constant dense<0.000000e+00> : vector<16x4xf32>
    %4 = tpu.matmul %2, %3, %cst_5 {dimension_numbers = #tpu.dot_dimension_numbers<[1], [0], [0], [1], [0, 0, 1, 1], [], []>} : vector<16x128xf32>, vector<128x4xf32>, vector<16x4xf32> -> vector<16x4xf32>
    %5 = tpu.transpose %4, [1, 0] : vector<16x4xf32> -> vector<4x16xf32>
    %c0_6 = arith.constant 0 : index
    %c0_7 = arith.constant 0 : index
    %6 = vector.load %arg4[%c0_6, %c0_7] : memref<128x4xf32, #tpu.memory_space<vmem>>, vector<128x4xf32>
    %cst_8 = arith.constant dense<0.000000e+00> : vector<16x4xf32>
    %7 = tpu.matmul %2, %6, %cst_8 {dimension_numbers = #tpu.dot_dimension_numbers<[1], [0], [0], [1], [0, 0, 1, 1], [], []>} : vector<16x128xf32>, vector<128x4xf32>, vector<16x4xf32> -> vector<16x4xf32>
    %c0_9 = arith.constant 0 : index
    %c0_10 = arith.constant 0 : index
    %8 = vector.load %arg6[%c0_9, %c0_10] : memref<16x256xf32, #tpu.memory_space<vmem>>, vector<16x256xf32>
    %c0_11 = arith.constant 0 : index
    %c0_12 = arith.constant 0 : index
    %9 = vector.load %arg5[%c0_11, %c0_12] : memref<256x64xf32, #tpu.memory_space<vmem>>, vector<256x64xf32>
    %cst_13 = arith.constant dense<0.000000e+00> : vector<16x64xf32>
    %10 = tpu.matmul %8, %9, %cst_13 {dimension_numbers = #tpu.dot_dimension_numbers<[1], [0], [0], [1], [0, 0, 1, 1], [], []>} : vector<16x256xf32>, vector<256x64xf32>, vector<16x64xf32> -> vector<16x64xf32>
    %c0_14 = arith.constant 0 : index
    %c0_15 = arith.constant 0 : index
    %11 = vector.load %arg7[%c0_14, %c0_15] : memref<16x16xf32, #tpu.memory_space<vmem>>, vector<16x16xf32>
    %12 = vector.extract_strided_slice %10 {offsets = [0, 0], sizes = [16, 16], strides = [1, 1]} : vector<16x64xf32> to vector<16x16xf32>
    %13 = vector.extract_strided_slice %7 {offsets = [0, 0], sizes = [16, 1], strides = [1, 1]} : vector<16x4xf32> to vector<16x1xf32>
    %14 = vector.broadcast %13 : vector<16x1xf32> to vector<16x16xf32>
    %15 = arith.addf %12, %14 : vector<16x16xf32>
    %16 = vector.extract_strided_slice %5 {offsets = [0, 0], sizes = [1, 16], strides = [1, 1]} : vector<4x16xf32> to vector<1x16xf32>
    %17 = vector.broadcast %16 : vector<1x16xf32> to vector<16x16xf32>
    %18 = arith.addf %15, %17 : vector<16x16xf32>
    %cst_16 = arith.constant 0.000000e+00 : f32
    %19 = vector.broadcast %cst_16 : f32 to vector<16x16xf32>
    %20 = arith.cmpf oge, %18, %19 : vector<16x16xf32>
    %cst_17 = arith.constant 0.00999999977 : f32
    %21 = vector.broadcast %cst_17 : f32 to vector<16x16xf32>
    %22 = arith.mulf %21, %18 : vector<16x16xf32>
    %23 = arith.select %20, %18, %22 : vector<16x16xi1>, vector<16x16xf32>
    %24 = arith.addf %23, %11 : vector<16x16xf32>
    %cst_18 = arith.constant dense<0xFF800000> : vector<16xf32>
    %25 = vector.multi_reduction <maximumf>, %24, %cst_18 [1] : vector<16x16xf32> to vector<16xf32>
    %26 = vector.shape_cast %25 : vector<16xf32> to vector<16x1xf32>
    %27 = vector.broadcast %26 : vector<16x1xf32> to vector<16x16xf32>
    %28 = arith.subf %24, %27 : vector<16x16xf32>
    %29 = math.exp %28 : vector<16x16xf32>
    %cst_19 = arith.constant dense<0.000000e+00> : vector<16xf32>
    %30 = vector.multi_reduction <add>, %29, %cst_19 [1] : vector<16x16xf32> to vector<16xf32>
    %31 = vector.shape_cast %30 : vector<16xf32> to vector<16x1xf32>
    %cst_20 = arith.constant 1.000000e-30 : f32
    %32 = vector.broadcast %cst_20 : f32 to vector<16x1xf32>
    %33 = arith.maximumf %31, %32 : vector<16x1xf32>
    %34 = tpu.reciprocal %33 {approx = true} : vector<16x1xf32> -> vector<16x1xf32>
    %35 = vector.broadcast %34 : vector<16x1xf32> to vector<16x16xf32>
    %36 = arith.mulf %29, %35 : vector<16x16xf32>
    %37 = vector.extract_strided_slice %2 {offsets = [0, 0], sizes = [16, 32], strides = [1, 1]} : vector<16x128xf32> to vector<16x32xf32>
    %cst_21 = arith.constant dense<0.000000e+00> : vector<16x32xf32>
    %38 = tpu.matmul %36, %37, %cst_21 {dimension_numbers = #tpu.dot_dimension_numbers<[1], [0], [0], [1], [0, 0, 1, 1], [], []>} : vector<16x16xf32>, vector<16x32xf32>, vector<16x32xf32> -> vector<16x32xf32>
    %39 = vector.extract_strided_slice %10 {offsets = [0, 16], sizes = [16, 16], strides = [1, 1]} : vector<16x64xf32> to vector<16x16xf32>
    %40 = vector.extract_strided_slice %7 {offsets = [0, 1], sizes = [16, 1], strides = [1, 1]} : vector<16x4xf32> to vector<16x1xf32>
    %41 = vector.broadcast %40 : vector<16x1xf32> to vector<16x16xf32>
    %42 = arith.addf %39, %41 : vector<16x16xf32>
    %43 = vector.extract_strided_slice %5 {offsets = [1, 0], sizes = [1, 16], strides = [1, 1]} : vector<4x16xf32> to vector<1x16xf32>
    %44 = vector.broadcast %43 : vector<1x16xf32> to vector<16x16xf32>
    %45 = arith.addf %42, %44 : vector<16x16xf32>
    %cst_22 = arith.constant 0.000000e+00 : f32
    %46 = vector.broadcast %cst_22 : f32 to vector<16x16xf32>
    %47 = arith.cmpf oge, %45, %46 : vector<16x16xf32>
    %cst_23 = arith.constant 0.00999999977 : f32
    %48 = vector.broadcast %cst_23 : f32 to vector<16x16xf32>
    %49 = arith.mulf %48, %45 : vector<16x16xf32>
    %50 = arith.select %47, %45, %49 : vector<16x16xi1>, vector<16x16xf32>
    %51 = arith.addf %50, %11 : vector<16x16xf32>
    %cst_24 = arith.constant dense<0xFF800000> : vector<16xf32>
    %52 = vector.multi_reduction <maximumf>, %51, %cst_24 [1] : vector<16x16xf32> to vector<16xf32>
    %53 = vector.shape_cast %52 : vector<16xf32> to vector<16x1xf32>
    %54 = vector.broadcast %53 : vector<16x1xf32> to vector<16x16xf32>
    %55 = arith.subf %51, %54 : vector<16x16xf32>
    %56 = math.exp %55 : vector<16x16xf32>
    %cst_25 = arith.constant dense<0.000000e+00> : vector<16xf32>
    %57 = vector.multi_reduction <add>, %56, %cst_25 [1] : vector<16x16xf32> to vector<16xf32>
    %58 = vector.shape_cast %57 : vector<16xf32> to vector<16x1xf32>
    %cst_26 = arith.constant 1.000000e-30 : f32
    %59 = vector.broadcast %cst_26 : f32 to vector<16x1xf32>
    %60 = arith.maximumf %58, %59 : vector<16x1xf32>
    %61 = tpu.reciprocal %60 {approx = true} : vector<16x1xf32> -> vector<16x1xf32>
    %62 = vector.broadcast %61 : vector<16x1xf32> to vector<16x16xf32>
    %63 = arith.mulf %56, %62 : vector<16x16xf32>
    %64 = vector.extract_strided_slice %2 {offsets = [0, 32], sizes = [16, 32], strides = [1, 1]} : vector<16x128xf32> to vector<16x32xf32>
    %cst_27 = arith.constant dense<0.000000e+00> : vector<16x32xf32>
    %65 = tpu.matmul %63, %64, %cst_27 {dimension_numbers = #tpu.dot_dimension_numbers<[1], [0], [0], [1], [0, 0, 1, 1], [], []>} : vector<16x16xf32>, vector<16x32xf32>, vector<16x32xf32> -> vector<16x32xf32>
    %66 = vector.extract_strided_slice %10 {offsets = [0, 32], sizes = [16, 16], strides = [1, 1]} : vector<16x64xf32> to vector<16x16xf32>
    %67 = vector.extract_strided_slice %7 {offsets = [0, 2], sizes = [16, 1], strides = [1, 1]} : vector<16x4xf32> to vector<16x1xf32>
    %68 = vector.broadcast %67 : vector<16x1xf32> to vector<16x16xf32>
    %69 = arith.addf %66, %68 : vector<16x16xf32>
    %70 = vector.extract_strided_slice %5 {offsets = [2, 0], sizes = [1, 16], strides = [1, 1]} : vector<4x16xf32> to vector<1x16xf32>
    %71 = vector.broadcast %70 : vector<1x16xf32> to vector<16x16xf32>
    %72 = arith.addf %69, %71 : vector<16x16xf32>
    %cst_28 = arith.constant 0.000000e+00 : f32
    %73 = vector.broadcast %cst_28 : f32 to vector<16x16xf32>
    %74 = arith.cmpf oge, %72, %73 : vector<16x16xf32>
    %cst_29 = arith.constant 0.00999999977 : f32
    %75 = vector.broadcast %cst_29 : f32 to vector<16x16xf32>
    %76 = arith.mulf %75, %72 : vector<16x16xf32>
    %77 = arith.select %74, %72, %76 : vector<16x16xi1>, vector<16x16xf32>
    %78 = arith.addf %77, %11 : vector<16x16xf32>
    %cst_30 = arith.constant dense<0xFF800000> : vector<16xf32>
    %79 = vector.multi_reduction <maximumf>, %78, %cst_30 [1] : vector<16x16xf32> to vector<16xf32>
    %80 = vector.shape_cast %79 : vector<16xf32> to vector<16x1xf32>
    %81 = vector.broadcast %80 : vector<16x1xf32> to vector<16x16xf32>
    %82 = arith.subf %78, %81 : vector<16x16xf32>
    %83 = math.exp %82 : vector<16x16xf32>
    %cst_31 = arith.constant dense<0.000000e+00> : vector<16xf32>
    %84 = vector.multi_reduction <add>, %83, %cst_31 [1] : vector<16x16xf32> to vector<16xf32>
    %85 = vector.shape_cast %84 : vector<16xf32> to vector<16x1xf32>
    %cst_32 = arith.constant 1.000000e-30 : f32
    %86 = vector.broadcast %cst_32 : f32 to vector<16x1xf32>
    %87 = arith.maximumf %85, %86 : vector<16x1xf32>
    %88 = tpu.reciprocal %87 {approx = true} : vector<16x1xf32> -> vector<16x1xf32>
    %89 = vector.broadcast %88 : vector<16x1xf32> to vector<16x16xf32>
    %90 = arith.mulf %83, %89 : vector<16x16xf32>
    %91 = vector.extract_strided_slice %2 {offsets = [0, 64], sizes = [16, 32], strides = [1, 1]} : vector<16x128xf32> to vector<16x32xf32>
    %cst_33 = arith.constant dense<0.000000e+00> : vector<16x32xf32>
    %92 = tpu.matmul %90, %91, %cst_33 {dimension_numbers = #tpu.dot_dimension_numbers<[1], [0], [0], [1], [0, 0, 1, 1], [], []>} : vector<16x16xf32>, vector<16x32xf32>, vector<16x32xf32> -> vector<16x32xf32>
    %93 = vector.extract_strided_slice %10 {offsets = [0, 48], sizes = [16, 16], strides = [1, 1]} : vector<16x64xf32> to vector<16x16xf32>
    %94 = vector.extract_strided_slice %7 {offsets = [0, 3], sizes = [16, 1], strides = [1, 1]} : vector<16x4xf32> to vector<16x1xf32>
    %95 = vector.broadcast %94 : vector<16x1xf32> to vector<16x16xf32>
    %96 = arith.addf %93, %95 : vector<16x16xf32>
    %97 = vector.extract_strided_slice %5 {offsets = [3, 0], sizes = [1, 16], strides = [1, 1]} : vector<4x16xf32> to vector<1x16xf32>
    %98 = vector.broadcast %97 : vector<1x16xf32> to vector<16x16xf32>
    %99 = arith.addf %96, %98 : vector<16x16xf32>
    %cst_34 = arith.constant 0.000000e+00 : f32
    %100 = vector.broadcast %cst_34 : f32 to vector<16x16xf32>
    %101 = arith.cmpf oge, %99, %100 : vector<16x16xf32>
    %cst_35 = arith.constant 0.00999999977 : f32
    %102 = vector.broadcast %cst_35 : f32 to vector<16x16xf32>
    %103 = arith.mulf %102, %99 : vector<16x16xf32>
    %104 = arith.select %101, %99, %103 : vector<16x16xi1>, vector<16x16xf32>
    %105 = arith.addf %104, %11 : vector<16x16xf32>
    %cst_36 = arith.constant dense<0xFF800000> : vector<16xf32>
    %106 = vector.multi_reduction <maximumf>, %105, %cst_36 [1] : vector<16x16xf32> to vector<16xf32>
    %107 = vector.shape_cast %106 : vector<16xf32> to vector<16x1xf32>
    %108 = vector.broadcast %107 : vector<16x1xf32> to vector<16x16xf32>
    %109 = arith.subf %105, %108 : vector<16x16xf32>
    %110 = math.exp %109 : vector<16x16xf32>
    %cst_37 = arith.constant dense<0.000000e+00> : vector<16xf32>
    %111 = vector.multi_reduction <add>, %110, %cst_37 [1] : vector<16x16xf32> to vector<16xf32>
    %112 = vector.shape_cast %111 : vector<16xf32> to vector<16x1xf32>
    %cst_38 = arith.constant 1.000000e-30 : f32
    %113 = vector.broadcast %cst_38 : f32 to vector<16x1xf32>
    %114 = arith.maximumf %112, %113 : vector<16x1xf32>
    %115 = tpu.reciprocal %114 {approx = true} : vector<16x1xf32> -> vector<16x1xf32>
    %116 = vector.broadcast %115 : vector<16x1xf32> to vector<16x16xf32>
    %117 = arith.mulf %110, %116 : vector<16x16xf32>
    %118 = vector.extract_strided_slice %2 {offsets = [0, 96], sizes = [16, 32], strides = [1, 1]} : vector<16x128xf32> to vector<16x32xf32>
    %cst_39 = arith.constant dense<0.000000e+00> : vector<16x32xf32>
    %119 = tpu.matmul %117, %118, %cst_39 {dimension_numbers = #tpu.dot_dimension_numbers<[1], [0], [0], [1], [0, 0, 1, 1], [], []>} : vector<16x16xf32>, vector<16x32xf32>, vector<16x32xf32> -> vector<16x32xf32>
    %120 = tpu.concatenate %38, %65, %92, %119 in 1 : vector<16x32xf32>, vector<16x32xf32>, vector<16x32xf32>, vector<16x32xf32> -> vector<16x128xf32>
    %c0_40 = arith.constant 0 : index
    %c0_41 = arith.constant 0 : index
    %121 = vector.load %arg8[%c0_40, %c0_41] : memref<16x128xf32, #tpu.memory_space<vmem>>, vector<16x128xf32>
    tpu.vector_store %arg8[%c0_40, %c0_41], %120 {strides = array<i32>} : memref<16x128xf32, #tpu.memory_space<vmem>>, vector<16x128xf32>,
    return
  }
  func.func @transform_0(%arg0: i32) -> (i32, i32) {
    %c0_i32 = arith.constant 0 : i32
    %c0_i32_0 = arith.constant 0 : i32
    %c0_i32_1 = arith.constant 0 : i32
    return %c0_i32, %c0_i32_0 : i32, i32
  }
  func.func @transform_1(%arg0: i32) -> (i32, i32) {
    %c0_i32 = arith.constant 0 : i32
    %c0_i32_0 = arith.constant 0 : i32
    %c0_i32_1 = arith.constant 0 : i32
    return %c0_i32, %c0_i32_0 : i32, i32
  }
  func.func @transform_2(%arg0: i32) -> (i32, i32) {
    %c0_i32 = arith.constant 0 : i32
    %c0_i32_0 = arith.constant 0 : i32
    %c0_i32_1 = arith.constant 0 : i32
    return %c0_i32, %c0_i32_0 : i32, i32
  }
  func.func @transform_3(%arg0: i32) -> (i32, i32) {
    %c0_i32 = arith.constant 0 : i32
    %c0_i32_0 = arith.constant 0 : i32
    %c0_i32_1 = arith.constant 0 : i32
    return %c0_i32, %c0_i32_0 : i32, i32
  }
  func.func @transform_4(%arg0: i32) -> (i32, i32) {
    %c0_i32 = arith.constant 0 : i32
    %c0_i32_0 = arith.constant 0 : i32
    %c0_i32_1 = arith.constant 0 : i32
    return %c0_i32, %c0_i32_0 : i32, i32
  }
  func.func @transform_5(%arg0: i32) -> (i32, i32) {
    %c0_i32 = arith.constant 0 : i32
    %c0_i32_0 = arith.constant 0 : i32
    return %arg0, %c0_i32 : i32, i32
  }
  func.func @transform_6(%arg0: i32) -> (i32, i32) {
    %c0_i32 = arith.constant 0 : i32
    %c0_i32_0 = arith.constant 0 : i32
    return %arg0, %c0_i32 : i32, i32
  }
  func.func @transform_7(%arg0: i32) -> (i32, i32) {
    %c0_i32 = arith.constant 0 : i32
    %c0_i32_0 = arith.constant 0 : i32
    return %arg0, %c0_i32 : i32, i32
  }
}

</mosaic_0001>

<bundles_post_ra>
// kernel: tpu_custom_call.1
= control target key start
LH: loop header
LB: loop body
LE: loop exit
PB: predicated region body
PF: predicated region fallthrough
CT: control target
= control target key end

     0   :  { %vm33_vm0 = vcmask 261120   ;;  %s1815_s0 = inlined_call_operand.vmem [shape: f32[16,32], index: 0, kind: input, shape index: {}]   ;;  %s1816_s1 = inlined_call_operand.vmem [shape: f32[32,128], index: 1, kind: input, shape index: {}]   ;;  %s1817_s2 = inlined_call_operand.vmem [shape: f32[128,4], index: 2, kind: input, shape index: {}]   ;;  %s1818_s3 = inlined_call_operand.vmem [shape: f32[128,4], index: 3, kind: input, shape index: {}]   ;;  %s1819_s4 = inlined_call_operand.vmem [shape: f32[256,64], index: 4, kind: input, shape index: {}]   ;;  %s1820_s5 = inlined_call_operand.vmem [shape: f32[16,256], index: 5, kind: input, shape index: {}]   ;;  %s1821_s6 = inlined_call_operand.vmem [shape: f32[16,16], index: 6, kind: input, shape index: {}]   ;;  %s1822_s7 = inlined_call_operand.hbm [shape: f32[16,128], index: 7, kind: output, shape index: {}]  }
   0x1   :  { %v32_v0 = vld [vmem:[%s1816_s1 + $0x18] sm:$0xff]  ;;  %v31_v1 = vld [vmem:[%s1816_s1 + $0x10] sm:$0xff]  ;;  %v27_v2 = vld [vmem:[%s1815_s0] sm:$0xff] }
   0x2   :  { %1208 = vmatprep.subr.mxu0 %v32_v0  ;;  %v30_v3 = vld [vmem:[%s1816_s1 + $0x8] sm:$0xff]  ;;  %1216 = vmatprep.mubr.msk.f32.mxu0 %vm33_vm0, %v27_v2  ;;  %v130_v4 = vld [vmem:[%s1817_s2 + $0x78] sm:$0xff]  ;;  %v129_v5 = vld [vmem:[%s1817_s2 + $0x70] sm:$0xff] }
   0x3   :  { %1209 = vmatpush3.msra.mxu0 %v32_v0  ;;  %1219 = vmatprep.subr.mxu1 %v130_v4  ;;  %v29_v6 = vld [vmem:[%s1816_s1] sm:$0xff]  ;;  %v128_v7 = vld [vmem:[%s1817_s2 + $0x68] sm:$0xff]  ;;  %v253_v9 = vld [vmem:[%s1818_s3 + $0x78] sm:$0xff] }
   0x4   :  { %1210 = vmatprep.subr.mxu0 %v31_v1  ;;  %1220 = vmatpush3.msra.mxu1 %v130_v4  ;;  %v28_v8 = vld [vmem:[%s1815_s0 + $0x8] sm:$0xff]  ;;  %v127_v10 = vld [vmem:[%s1817_s2 + $0x60] sm:$0xff]  ;;  %v252_v11 = vld [vmem:[%s1818_s3 + $0x70] sm:$0xff] }
   0x5   :  { %1211 = vmatpush3.msra.mxu0 %v31_v1  ;;  %1221 = vmatprep.subr.mxu1 %v129_v5  ;;  %v126_v12 = vld [vmem:[%s1817_s2 + $0x58] sm:$0xff]  ;;  %v251_v13 = vld [vmem:[%s1818_s3 + $0x68] sm:$0xff]  ;;  %v125_v14 = vld [vmem:[%s1817_s2 + $0x50] sm:$0xff] }
   0x6   :  { %1212 = vmatprep.subr.mxu0 %v30_v3  ;;  %1222 = vmatpush3.msra.mxu1 %v129_v5  ;;  %v250_v15 = vld [vmem:[%s1818_s3 + $0x60] sm:$0xff] }
   0x7   :  { %1213 = vmatpush3.msra.mxu0 %v30_v3  ;;  %1223 = vmatprep.subr.mxu1 %v128_v7 }
   0x8   :  { %1214 = vmatprep.subr.mxu0 %v29_v6  ;;  %1224 = vmatpush3.msra.mxu1 %v128_v7 }
   0x9   :  { %1215 = vmatpush3.msra.mxu0 %v29_v6  ;;  %1225 = vmatprep.subr.mxu1 %v127_v10 }
   0xa   :  { %1217 = vmatmul.mubr.msk.f32.vlgmr.msra.gmra.mxu0 %vm33_vm0, %v28_v8  ;;  %1254 = vmatprep.subr.mxu0 %v253_v9 }
   0xb   :  { %1255 = vmatpush3.msra.mxu0 %v253_v9  ;;  %1226 = vmatpush3.msra.mxu1 %v127_v10 }
   0xc   :  { %1256 = vmatprep.subr.mxu0 %v252_v11  ;;  %1227 = vmatprep.subr.mxu1 %v126_v12 }
   0xd   :  { %1257 = vmatpush3.msra.mxu0 %v252_v11 }
   0xe   :  { %12 = vsyncpa [#allocation3], 0  ;;  %1258 = vmatprep.subr.mxu0 %v251_v13  ;;  %1228 = vmatpush3.msra.mxu1 %v126_v12  ;;  %v124_v16 = vld [vmem:[%s1817_s2 + $0x48] sm:$0xff]  ;;  %v249_v17 = vld [vmem:[%s1818_s3 + $0x58] sm:$0xff]  ;;  %v1393_v39 = vmov 1   ;;  %s1396_s18 = smov 16  }
   0xf   :  { %1259 = vmatpush3.msra.mxu0 %v251_v13  ;;  %1229 = vmatprep.subr.mxu1 %v125_v14  ;;  %v123_v18 = vld [vmem:[%s1817_s2 + $0x40] sm:$0xff]  ;;  %v248_v19 = vld [vmem:[%s1818_s3 + $0x50] sm:$0xff]  ;;  %v122_v20 = vld [vmem:[%s1817_s2 + $0x38] sm:$0xff]  ;;  %s1397_s1 = smov 32   ;;  %s1398_s21 = smov 48   ;;  %vm610_vm3 = vcmask 261248  }
  0x10   :  { %1260 = vmatprep.subr.mxu0 %v250_v15  ;;  %1230 = vmatpush3.msra.mxu1 %v125_v14  ;;  %v247_v21 = vld [vmem:[%s1818_s3 + $0x48] sm:$0xff]  ;;  %v121_v22 = vld [vmem:[%s1817_s2 + $0x30] sm:$0xff]  ;;  %v246_v23 = vld [vmem:[%s1818_s3 + $0x40] sm:$0xff]  ;;  %vm770_vm6 = vcmask 392448   ;;  %vm928_vm9 = vcmask 523648   ;;  %s1401_s22 = smov 96  }
  0x11   :  { %1261 = vmatpush3.msra.mxu0 %v250_v15  ;;  %1231 = vmatprep.subr.mxu1 %v124_v16  ;;  %v120_v24 = vld [vmem:[%s1817_s2 + $0x28] sm:$0xff]  ;;  %v245_v25 = vld [vmem:[%s1818_s3 + $0x38] sm:$0xff]  ;;  %v119_v26 = vld [vmem:[%s1817_s2 + $0x20] sm:$0xff]  ;;  %vm468_vm11 = vcmask 130048   ;;  %s1402_s23 = smov 80   ;;  %s1403_s0 = smov 64  }
  0x12   :  { %1262 = vmatprep.subr.mxu0 %v249_v17  ;;  %1232 = vmatpush3.msra.mxu1 %v124_v16  ;;  %v244_v27 = vld [vmem:[%s1818_s3 + $0x30] sm:$0xff]  ;;  %v118_v28 = vld [vmem:[%s1817_s2 + $0x18] sm:$0xff]  ;;  %v243_v29 = vld [vmem:[%s1818_s3 + $0x28] sm:$0xff]  ;;  %vm1078_vm13 = vcmask 523264   ;;  %vm1081_vm14 = vcmask 785408   ;;  %s1404_s24 = smov [#allocation2]  }
  0x13   :  { %1263 = vmatpush3.msra.mxu0 %v249_v17  ;;  %1233 = vmatprep.subr.mxu1 %v123_v18  ;;  %v117_v30 = vld [vmem:[%s1817_s2 + $0x10] sm:$0xff]  ;;  %v242_v31 = vld [vmem:[%s1818_s3 + $0x20] sm:$0xff]  ;;  %v241_v32 = vld [vmem:[%s1818_s3 + $0x18] sm:$0xff]  ;;  %v1394_v17 = vmov 2   ;;  %s1091_s25 = sshll.u32 %s1404_s24, 4  ;;  %s1092_s25 = int_to_ptr.vmem [resolvable:$true] %s1091_s25 }
  0x14   :  { %1264 = vmatprep.subr.mxu0 %v248_v19  ;;  %1234 = vmatpush3.msra.mxu1 %v123_v18  ;;  %v240_v33 = vld [vmem:[%s1818_s3 + $0x10] sm:$0xff]  ;;  %v239_v34 = vld [vmem:[%s1818_s3 + $0x8] sm:$0xff]  ;;  %v238_v35 = vld [vmem:[%s1818_s3] sm:$0xff]  ;;  %v1395_v18 = vmov 3   ;;  %s1371_s26 = scalar_lea.vmem %s1092_s25, 256  ;;  %p1376_p1 = scmp.lt.s32.totalorder %s1092_s25, %s1092_s25 }
  0x15   :  { %1265 = vmatpush3.msra.mxu0 %v248_v19  ;;  %1235 = vmatprep.subr.mxu1 %v122_v20  ;;  %v116_v36 = vld [vmem:[%s1817_s2 + $0x8] sm:$0xff]  ;;  %v115_v37 = vld [vmem:[%s1817_s2] sm:$0xff]  ;;  %v364_v38 = vld [vmem:[%s1819_s4 + $0xf8] sm:$0xff]  ;;  %p1372_p0 = scmp.ne.s32.totalorder %s1092_s25, %s1371_s26  ;;  %p1377_p2 = scmp.lt.s32.totalorder %s1371_s26, %s1371_s26 }
  0x16   :  { %1266 = vmatprep.subr.mxu0 %v247_v21  ;;  %1236 = vmatpush3.msra.mxu1 %v122_v20  ;;  %v348_v42 = vld [vmem:[%s1819_s4 + $0x78] sm:$0xff]  ;;  %v363_v43 = vld [vmem:[%s1819_s4 + $0xf0] sm:$0xff]  ;;  %v362_v45 = vld [vmem:[%s1819_s4 + $0xe8] sm:$0xff] }
  0x17   :  { %1267 = vmatpush3.msra.mxu0 %v247_v21  ;;  %1237 = vmatprep.subr.mxu1 %v121_v22  ;;  %v347_v44 = vld [vmem:[%s1819_s4 + $0x70] sm:$0xff]  ;;  %v330_v46 = vld [vmem:[%s1820_s5 + $0x8] sm:$0xff]  ;;  %v361_v48 = vld [vmem:[%s1819_s4 + $0xe0] sm:$0xff]  ;;  %v454_v21 = vlaneseq  ;;  %p1378_p3 = por %p1377_p2, %p1376_p1 }
  0x18   :  { %1268 = vmatprep.subr.mxu0 %v246_v23  ;;  %1238 = vmatpush3.msra.mxu1 %v121_v22  ;;  %v346_v47 = vld [vmem:[%s1819_s4 + $0x68] sm:$0xff]  ;;  %v345_v49 = vld [vmem:[%s1819_s4 + $0x60] sm:$0xff]  ;;  %v360_v50 = vld [vmem:[%s1819_s4 + $0xd8] sm:$0xff] }
  0x19   :  { %1269 = vmatpush3.msra.mxu0 %v246_v23  ;;  %1239 = vmatprep.subr.mxu1 %v120_v24  ;;  %v344_v51 = vld [vmem:[%s1819_s4 + $0x58] sm:$0xff]  ;;  %v359_v52 = vld [vmem:[%s1819_s4 + $0xd0] sm:$0xff]  ;;  %v358_v54 = vld [vmem:[%s1819_s4 + $0xc8] sm:$0xff]  ;;  %v455_v22 = vshrl.u32 %v454_v21, 7  ;;  %p1379_p4 = pnand %p1378_p3, %p1372_p0 }
  0x1a   :  { %1270 = vmatprep.subr.mxu0 %v245_v25  ;;  %1240 = vmatpush3.msra.mxu1 %v120_v24  ;;  %v343_v53 = vld [vmem:[%s1819_s4 + $0x50] sm:$0xff]  ;;  %v342_v55 = vld [vmem:[%s1819_s4 + $0x48] sm:$0xff]  ;;  %v357_v56 = vld [vmem:[%s1819_s4 + $0xc0] sm:$0xff] }
  0x1b   :  { %1271 = vmatpush3.msra.mxu0 %v245_v25  ;;  %1241 = vmatprep.subr.mxu1 %v119_v26  ;;  %v341_v57 = vld [vmem:[%s1819_s4 + $0x40] sm:$0xff]  ;;  %v356_v58 = vld [vmem:[%s1819_s4 + $0xb8] sm:$0xff]  ;;  %v355_v60 = vld [vmem:[%s1819_s4 + $0xb0] sm:$0xff]  ;;  %v586_v23 = vsub.s32 1, %v455_v22  ;;  %v456_v24 = vsub.s32 0, %v455_v22 }
  0x1c   :  { %1272 = vmatprep.subr.mxu0 %v244_v27  ;;  %1242 = vmatpush3.msra.mxu1 %v119_v26  ;;  %v340_v59 = vld [vmem:[%s1819_s4 + $0x38] sm:$0xff]  ;;  %v339_v61 = vld [vmem:[%s1819_s4 + $0x30] sm:$0xff]  ;;  %v354_v62 = vld [vmem:[%s1819_s4 + $0xa8] sm:$0xff] }
  0x1d   :  { %1273 = vmatpush3.msra.mxu0 %v244_v27  ;;  %1243 = vmatprep.subr.mxu1 %v118_v28  ;;  %v338_v63 = vld [vmem:[%s1819_s4 + $0x28] sm:$0xff]  ;;  %v353_v0 = vld [vmem:[%s1819_s4 + $0xa0] sm:$0xff]  ;;  %v352_v2 = vld [vmem:[%s1819_s4 + $0x98] sm:$0xff]  ;;  %v748_v27 = vsub.s32 2, %v455_v22 }
  0x1e   :  { %1274 = vmatprep.subr.mxu0 %v243_v29  ;;  %1244 = vmatpush3.msra.mxu1 %v118_v28  ;;  %v337_v1 = vld [vmem:[%s1819_s4 + $0x20] sm:$0xff]  ;;  %v336_v3 = vld [vmem:[%s1819_s4 + $0x18] sm:$0xff]  ;;  %v351_v4 = vld [vmem:[%s1819_s4 + $0x90] sm:$0xff] }
  0x1f   :  { %1275 = vmatpush3.msra.mxu0 %v243_v29  ;;  %1245 = vmatprep.subr.mxu1 %v117_v30  ;;  %v335_v5 = vld [vmem:[%s1819_s4 + $0x10] sm:$0xff]  ;;  %v350_v6 = vld [vmem:[%s1819_s4 + $0x88] sm:$0xff]  ;;  %v349_v8 = vld [vmem:[%s1819_s4 + $0x80] sm:$0xff] }
  0x20   :  { %1276 = vmatprep.subr.mxu0 %v242_v31  ;;  %1246 = vmatpush3.msra.mxu1 %v117_v30  ;;  %v334_v7 = vld [vmem:[%s1819_s4 + $0x8] sm:$0xff]  ;;  %v333_v9 = vld [vmem:[%s1819_s4] sm:$0xff]  ;;  %v332_v11 = vld [vmem:[%s1820_s5 + $0x18] sm:$0xff]  ;;  %v906_v30 = vsub.s32 3, %v455_v22 }
  0x21   :  { %1277 = vmatpush3.msra.mxu0 %v242_v31  ;;  %1247 = vmatprep.subr.mxu1 %v116_v36  ;;  %v329_v10 = vld [vmem:[%s1820_s5] sm:$0xff]  ;;  %v331_v12 = vld [vmem:[%s1820_s5 + $0x10] sm:$0xff]  ;;  %v1702_v20 = vld [vmem:[%s1821_s6 + $0x8] sm:$0xff] }
  0x22   :  { %1278 = vmatprep.subr.mxu0 %v241_v32  ;;  %1248 = vmatpush3.msra.mxu1 %v116_v36  ;;  %v1696_v19 = vld [vmem:[%s1821_s6] sm:$0xff]  ;;  %s1400_s6 = smov 112  }
  0x23   :  { %1279 = vmatpush3.msra.mxu0 %v241_v32  ;;  %1249 = vmatprep.subr.mxu1 %v115_v37  ;;  %v1399_v32 = vmov 0  }
  0x24   :  { %1280 = vmatprep.subr.mxu0 %v240_v33  ;;  %1250 = vmatpush3.msra.mxu1 %v115_v37 }
  0x25   :  { %1281 = vmatpush3.msra.mxu0 %v240_v33  ;;  %1154 = vmatprep.subr.mxu1 %v364_v38 }
  0x26   :  { %1282 = vmatprep.subr.mxu0 %v239_v34  ;;  %1332 = vset.pattern.permute.xlu1 %v1393_v39 }
  0x27   :  { %1283 = vmatpush3.msra.mxu0 %v239_v34 }
  0x28   :  { %1284 = vmatprep.subr.mxu0 %v238_v35 }
  0x29   :  { %1285 = vmatpush3.msra.mxu0 %v238_v35 }
  0xca   :  { %v1566_v40 = vpop.f32.mrf.mxu0 }
  0xcb   :  { %1289 = vmatprep.subr.mxu0 %v1566_v40 }
  0xcc   :  { %v1569_v41 = vpop.f32.mrf.mxu0 }
  0xcd   :  { %1251 = vmatprep.mubr.f32.mxu1 %v1569_v41  ;;  %1286 = vmatprep.mubr.f32.mxu0 %v1569_v41 }
  0xce   :  { %1252 = vmatmul.mubr.f32.vlgmr.msra.gmra.mxu1 %v1566_v40  ;;  %1287 = vmatmul.mubr.f32.vlgmr.msra.gmra.mxu0 %v1566_v40 }
  0xcf   :  { %1290 = vmatpush3.msra.mxu0 %v1566_v40  ;;  %1155 = vmatpush3.msra.mxu1 %v348_v42 }
  0xd0   :  { %1291 = vmatprep.subr.mxu0 %v1569_v41  ;;  %1156 = vmatprep.subr.mxu1 %v363_v43 }
  0xd1   :  { %1292 = vmatpush3.msra.mxu0 %v1569_v41  ;;  %1157 = vmatpush3.msra.mxu1 %v347_v44 }
  0xd2   :  { %1158 = vmatprep.subr.mxu1 %v362_v45  ;;  %429 = vmatprep.mubr.f32.mxu1 %v330_v46 }
  0xd3   :  { %1159 = vmatpush3.msra.mxu1 %v346_v47 }
  0xd4   :  { %1160 = vmatprep.subr.mxu1 %v361_v48 }
  0xd5   :  { %1161 = vmatpush3.msra.mxu1 %v345_v49 }
  0xd6   :  { %1162 = vmatprep.subr.mxu1 %v360_v50 }
  0xd7   :  { %1163 = vmatpush3.msra.mxu1 %v344_v51 }
  0xd8   :  { %1164 = vmatprep.subr.mxu1 %v359_v52 }
  0xd9   :  { %1165 = vmatpush3.msra.mxu1 %v343_v53 }
  0xda   :  { %1166 = vmatprep.subr.mxu1 %v358_v54 }
  0xdb   :  { %1167 = vmatpush3.msra.mxu1 %v342_v55 }
  0xdc   :  { %1168 = vmatprep.subr.mxu1 %v357_v56 }
  0xdd   :  { %1169 = vmatpush3.msra.mxu1 %v341_v57 }
  0xde   :  { %1170 = vmatprep.subr.mxu1 %v356_v58 }
  0xdf   :  { %1171 = vmatpush3.msra.mxu1 %v340_v59 }
  0xe0   :  { %1172 = vmatprep.subr.mxu1 %v355_v60 }
  0xe1   :  { %1173 = vmatpush3.msra.mxu1 %v339_v61 }
  0xe2   :  { %1174 = vmatprep.subr.mxu1 %v354_v62 }
  0xe3   :  { %1175 = vmatpush3.msra.mxu1 %v338_v63 }
  0xe4   :  { %1176 = vmatprep.subr.mxu1 %v353_v0 }
  0xe5   :  { %1177 = vmatpush3.msra.mxu1 %v337_v1 }
  0xe6   :  { %1178 = vmatprep.subr.mxu1 %v352_v2 }
  0xe7   :  { %1179 = vmatpush3.msra.mxu1 %v336_v3 }
  0xe8   :  { %1180 = vmatprep.subr.mxu1 %v351_v4 }
  0xe9   :  { %1181 = vmatpush3.msra.mxu1 %v335_v5 }
  0xea   :  { %1182 = vmatprep.subr.mxu1 %v350_v6 }
  0xeb   :  { %1183 = vmatpush3.msra.mxu1 %v334_v7 }
  0xec   :  { %1184 = vmatprep.subr.mxu1 %v349_v8 }
  0xed   :  { %1185 = vmatpush3.msra.mxu1 %v333_v9 }
  0xee   :  { %430 = vmatmul.mubr.f32.vlgmr.msra.gmra.mxu1 %v329_v10 }
  0xef   :  { %434 = vmatprep.mubr.f32.mxu1 %v332_v11 }
  0xf2   :  { %435 = vmatmul.mubr.f32.gmra.mxu1 %v331_v12 }
 0x18e   :  { %v1253_v13 = vpop.f32.mrf.mxu1  ;;  %v1683_v14 = vpop.f32.mrf.mxu0 }
 0x18f   :  { %579 = vperm.xlu1 %1332, %v1683_v14  }
 0x190   :  { %v197_v15 = vpop.f32.mrf.mxu1  ;;  %v1686_v16 = vpop.f32.mrf.mxu0 }
 0x191   :  { %206 = vxpose.xlu0.b32.start [1/2] (short) (narrow) %v197_v15, 8 }
 0x193   :  { %575 = vperm.xlu1 %1332, %v1686_v16  }
 0x195   :  { %207 = vxpose.xlu0.b32.end [2/2] (short) (narrow) %v1253_v13, 8 }
 0x197   :  { %1334 = vset.pattern.permute.xlu1 %v1394_v17 }
 0x198   :  { %741 = vperm.xlu1 %1334, %v1683_v14  }
 0x19c   :  { %1335 = vset.pattern.permute.xlu1 %v1395_v18 }
 0x19d   :  { %895 = vperm.xlu1 %1335, %v1686_v16  }
 0x1a1   :  { %899 = vperm.xlu1 %1335, %v1683_v14  }
 0x1a5   :  { %602 = vrot.lane.b32.xlu1 %v1696_v19, %s1396_s18 }
 0x1a6   :  { %1336 = vset.pattern.permute.xlu1 %v1399_v32 }
 0x1a9   :  { %604 = vrot.lane.b32.xlu1 %v1702_v20, %s1396_s18 }
 0x1ad   :  { %762 = vrot.lane.b32.xlu1 %v1696_v19, %s1397_s1 }
 0x1ae   :  { %v1186_v38 = vpop.f32.mrf.mxu1 }
 0x1b0   :  { %v1187_v42 = vpop.f32.mrf.mxu1 }
 0x1b1   :  { %v1715_v47 = vadd.f32 %v1187_v42, %v1186_v38 }
 0x1b2   :  { %v1189_v43 = vpop.f32.mrf.mxu1 }
 0x1b4   :  { %v1190_v45 = vpop.f32.mrf.mxu1 }
 0x1b5   :  { %v1717_v48 = vadd.f32 %v1190_v45, %v1189_v43 }
 0x1be   :  { %1333 = vset.pattern.permute.xlu0 %v1394_v17 }
 0x1bf   :  { %737 = vperm.xlu0 %1333, %v1686_v16  }
 0x1c3   :  { %922 = vrot.lane.b32.xlu0 %v1702_v20, %s1398_s21 }
 0x1c4   :  { %1337 = vset.pattern.permute.xlu0 %v1399_v32 }
 0x20a   :  { %v580_v33 = vpop.permute.xlu1 %579 }
 0x20b   :  { %v583_v49 = vadd.f32 %v1717_v48, %v580_v33 }
 0x20d   :  { %v222_v25 = vpop.trf.xlu0 }
 0x20e   :  { %v587_v26 = vrot.slane %v222_v25, %v586_v23  ;;  %v1709_v28 = vrot.slane %v222_v25, %v456_v24  ;;  %v749_v29 = vrot.slane %v222_v25, %v748_v27  ;;  %v907_v31 = vrot.slane %v222_v25, %v906_v30  ;;  %v576_v34 = vpop.permute.xlu1 %575 }
 0x20f   :  { %v582_v50 = vadd.f32 %v1715_v47, %v576_v34 }
 0x210   :  { %589 = vrot.lane.b32.xlu1 %v587_v26, %s1396_s18 }
 0x213   :  { %v742_v35 = vpop.permute.xlu1 %741 }
 0x214   :  { %751 = vrot.lane.b32.xlu1 %v749_v29, %s1397_s1  ;;  %v745_v55 = vadd.f32 %v1717_v48, %v742_v35 }
 0x218   :  { %909 = vrot.lane.b32.xlu1 %v907_v31, %s1398_s21  ;;  %v896_v36 = vpop.permute.xlu1 %895 }
 0x219   :  { %v902_v2 = vadd.f32 %v1715_v47, %v896_v36 }
 0x21c   :  { %764 = vrot.lane.b32.xlu1 %v1702_v20, %s1397_s1  ;;  %v900_v37 = vpop.permute.xlu1 %899 }
 0x21d   :  { %v903_v3 = vadd.f32 %v1717_v48, %v900_v37 }
 0x220   :  { %920 = vrot.lane.b32.xlu1 %v1696_v19, %s1398_s21  ;;  %v603_v39 = vpop.permute.xlu1 %602 }
 0x224   :  { %v605_v44 = vpop.permute.xlu1 %604 }
 0x228   :  { %v763_v46 = vpop.permute.xlu1 %762 }
 0x23a   :  { %v738_v51 = vpop.permute.xlu0 %737 }
 0x23b   :  { %v744_v56 = vadd.f32 %v1715_v47, %v738_v51 }
 0x23e   :  { %v923_v24 = vpop.permute.xlu0 %922 }
 0x282   :  { %v590_v52 = vpop.permute.xlu1 %589 }
 0x283   :  { %v592_v53 = vadd.f32 %v590_v52, %v582_v50  ;;  %v593_v54 = vadd.f32 %v590_v52, %v583_v49 }
 0x285   :  { %v596_v57 = vmul.f32 0.01, %v592_v53  ;;  %v597_v58 = vmul.f32 0.01, %v593_v54  ;;  %vm595_vm1 = vcmp.ge.f32.partialorder %v593_v54, 0.0  ;;  %vm594_vm2 = vcmp.ge.f32.partialorder %v592_v53, 0.0 }
 0x286   :  { %v752_v59 = vpop.permute.xlu1 %751 }
 0x287   :  { %v754_v60 = vadd.f32 %v752_v59, %v744_v56  ;;  %v755_v61 = vadd.f32 %v752_v59, %v745_v55  ;;  %v599_v62 = vsel %vm595_vm1, %v593_v54, %v597_v58  ;;  %v598_v63 = vsel %vm594_vm2, %v592_v53, %v596_v57 }
 0x288   :  { %v609_v0 = vadd.f32 %v605_v44, %v599_v62  ;;  %v608_v1 = vadd.f32 %v603_v39, %v598_v63 }
 0x289   :  { %v758_v4 = vmul.f32 0.01, %v754_v60  ;;  %vm756_vm4 = vcmp.ge.f32.partialorder %v754_v60, 0.0  ;;  %v759_v8 = vmul.f32 0.01, %v755_v61  ;;  %vm757_vm5 = vcmp.ge.f32.partialorder %v755_v61, 0.0 }
 0x28a   :  { %v910_v5 = vpop.permute.xlu1 %909  ;;  %v614_v6 = vsel %vm610_vm3, %v609_v0, -inf  ;;  %v611_v7 = vsel %vm610_vm3, %v608_v1, -inf }
 0x28b   :  { %v912_v9 = vadd.f32 %v910_v5, %v902_v2  ;;  %v913_v10 = vadd.f32 %v910_v5, %v903_v3  ;;  %615 = vmax.xlane.f32.xlu0 %v614_v6  ;;  %612 = vmax.xlane.f32.xlu1 %v611_v7  ;;  %v760_v11 = vsel %vm756_vm4, %v754_v60, %v758_v4 }
 0x28c   :  { %v768_v13 = vadd.f32 %v763_v46, %v760_v11  ;;  %v761_v17 = vsel %vm757_vm5, %v755_v61, %v759_v8 }
 0x28d   :  { %vm915_vm7 = vcmp.ge.f32.partialorder %v913_v10, 0.0  ;;  %v917_v12 = vmul.f32 0.01, %v913_v10  ;;  %v916_v21 = vmul.f32 0.01, %v912_v9  ;;  %vm914_vm8 = vcmp.ge.f32.partialorder %v912_v9, 0.0 }
 0x28e   :  { %v765_v15 = vpop.permute.xlu1 %764  ;;  %v771_v23 = vsel %vm770_vm6, %v768_v13, -inf }
 0x28f   :  { %v769_v22 = vadd.f32 %v765_v15, %v761_v17  ;;  %v919_v25 = vsel %vm915_vm7, %v913_v10, %v917_v12  ;;  %772 = vmax.xlane.f32.xlu0 %v771_v23  ;;  %v918_v29 = vsel %vm914_vm8, %v912_v9, %v916_v21 }
 0x290   :  { %v927_v30 = vadd.f32 %v923_v24, %v919_v25 }
 0x291   :  { %v774_v26 = vsel %vm770_vm6, %v769_v22, -inf }
 0x292   :  { %v921_v27 = vpop.permute.xlu1 %920  ;;  %v932_v33 = vsel %vm928_vm9, %v927_v30, -inf }
 0x293   :  { %v926_v31 = vadd.f32 %v921_v27, %v918_v29  ;;  %775 = vmax.xlane.f32.xlu0 %v774_v26 }
 0x295   :  { %v929_v32 = vsel %vm928_vm9, %v926_v31, -inf }
 0x296   :  { %930 = vmax.xlane.f32.xlu1 %v929_v32 }
 0x297   :  { %933 = vmax.xlane.f32.xlu0 %v932_v33 }
 0x2a7   :  { %444 = vperm.xlu1 %1336, %v1686_v16  }
 0x2ad   :  { %449 = vperm.xlu0 %1337, %v1683_v14  }
 0x2b1   :  { %1338 = vset.pattern.permute.xlu0 %v1395_v18 }
 0x314   :  { %v616_v34 = vpop.xlane.xlu0 %615  ;;  %v613_v35 = vpop.xlane.xlu1 %612 }
 0x315   :  { %v617_v36 = vsub.f32 %v608_v1, %v613_v35  ;;  %v618_v37 = vsub.f32 %v609_v0, %v616_v34 }
 0x317   :  { %v619_v38 = vmul.f32 1.442695, %v617_v36  ;;  %v621_v42 = vmul.f32 1.442695, %v618_v37 }
 0x318   :  { %v773_v39 = vpop.xlane.xlu0 %772 }
 0x319   :  { %1339 = vpow2.f32 %v619_v38  ;;  %v777_v43 = vsub.f32 %v768_v13, %v773_v39 }
 0x31a   :  { %1341 = vpow2.f32 %v621_v42 }
 0x31b   :  { %v779_v45 = vmul.f32 1.442695, %v777_v43 }
 0x31c   :  { %v776_v44 = vpop.xlane.xlu0 %775 }
 0x31d   :  { %v778_v46 = vsub.f32 %v769_v22, %v776_v44  ;;  %1343 = vpow2.f32 %v779_v45 }
 0x31f   :  { %v931_v49 = vpop.xlane.xlu1 %930  ;;  %v781_v16 = vmul.f32 1.442695, %v778_v46 }
 0x320   :  { %v935_v50 = vsub.f32 %v926_v31, %v931_v49  ;;  %v934_v14 = vpop.xlane.xlu0 %933 }
 0x321   :  { %1345 = vpow2.f32 %v781_v16  ;;  %v936_v51 = vsub.f32 %v927_v30, %v934_v14 }
 0x322   :  { %v937_v18 = vmul.f32 1.442695, %v935_v50 }
 0x323   :  { %v939_v54 = vmul.f32 1.442695, %v936_v51 }
 0x324   :  { %1347 = vpow2.f32 %v937_v18 }
 0x325   :  { %1349 = vpow2.f32 %v939_v54 }
 0x326   :  { %v1728_v52 = vpop.eup %1339 }
 0x327   :  { %625 = vrot.lane.b32.xlu1 %v1728_v52, %s1400_s6  ;;  %v1733_v56 = vpop.eup %1341 }
 0x328   :  { %v450_v53 = vpop.permute.xlu0 %449 }
 0x329   :  { %v453_v55 = vadd.f32 %v1717_v48, %v450_v53 }
 0x32a   :  { %v1738_v59 = vpop.eup %1343 }
 0x32b   :  { %v459_v57 = vadd.f32 %v1709_v28, %v453_v55  ;;  %627 = vrot.lane.b32.xlu1 %v1733_v56, %s1400_s6 }
 0x32d   :  { %v463_v58 = vmul.f32 0.01, %v459_v57  ;;  %vm461_vm10 = vcmp.ge.f32.partialorder %v459_v57, 0.0 }
 0x32e   :  { %v1743_v48 = vpop.eup %1345 }
 0x32f   :  { %785 = vrot.lane.b32.xlu1 %v1738_v59, %s1401_s22  ;;  %v465_v60 = vsel %vm461_vm10, %v459_v57, %v463_v58 }
 0x330   :  { %v467_v61 = vadd.f32 %v465_v60, %v1702_v20  ;;  %v445_v20 = vpop.permute.xlu1 %444 }
 0x331   :  { %v1748_v63 = vpop.eup %1347  ;;  %v452_v1 = vadd.f32 %v1715_v47, %v445_v20 }
 0x332   :  { %v472_v62 = vsel %vm468_vm11, %v467_v61, -inf  ;;  %v1752_v0 = vpop.eup %1349 }
 0x333   :  { %473 = vmax.xlane.f32.xlu0 %v472_v62  ;;  %787 = vrot.lane.b32.xlu1 %v1743_v48, %s1401_s22  ;;  %v458_v2 = vadd.f32 %v1709_v28, %v452_v1 }
 0x335   :  { %v462_v3 = vmul.f32 0.01, %v458_v2  ;;  %vm460_vm12 = vcmp.ge.f32.partialorder %v458_v2, 0.0 }
 0x337   :  { %943 = vrot.lane.b32.xlu1 %v1748_v63, %s1402_s23  ;;  %v464_v4 = vsel %vm460_vm12, %v458_v2, %v462_v3 }
 0x338   :  { %v466_v5 = vadd.f32 %v464_v4, %v1696_v19 }
 0x33a   :  { %v469_v6 = vsel %vm468_vm11, %v466_v5, -inf }
 0x33b   :  { %945 = vrot.lane.b32.xlu1 %v1752_v0, %s1402_s23 }
 0x35f   :  { %470 = vmax.xlane.f32.xlu1 %v469_v6 }
 0x399   :  { %v626_v7 = vpop.permute.xlu1 %625 }
 0x39a   :  { %v631_v8 = vsel %vm468_vm11, %v626_v7, 0.0 }
 0x39b   :  { %632 = vadd.xlane.f32.xlu1 %v631_v8 }
 0x39d   :  { %v628_v9 = vpop.permute.xlu1 %627 }
 0x39e   :  { %v634_v10 = vsel %vm468_vm11, %v628_v9, 0.0 }
 0x39f   :  { %635 = vadd.xlane.f32.xlu0 %v634_v10 }
 0x3a1   :  { %v786_v11 = vpop.permute.xlu1 %785 }
 0x3a2   :  { %v791_v47 = vsel %vm468_vm11, %v786_v11, 0.0 }
 0x3a3   :  { %792 = vadd.xlane.f32.xlu1 %v791_v47 }
 0x3a5   :  { %v788_v28 = vpop.permute.xlu1 %787 }
 0x3a6   :  { %v794_v12 = vsel %vm468_vm11, %v788_v28, 0.0 }
 0x3a7   :  { %795 = vadd.xlane.f32.xlu0 %v794_v12 }
 0x3a9   :  { %v944_v19 = vpop.permute.xlu1 %943 }
 0x3aa   :  { %v949_v13 = vsel %vm468_vm11, %v944_v19, 0.0 }
 0x3ab   :  { %950 = vadd.xlane.f32.xlu1 %v949_v13 }
 0x3ad   :  { %v946_v15 = vpop.permute.xlu1 %945 }
 0x3ae   :  { %v952_v17 = vsel %vm468_vm11, %v946_v15, 0.0 }
 0x3af   :  { %953 = vadd.xlane.f32.xlu0 %v952_v17 }
 0x3bc   :  { %v474_v21 = vpop.xlane.xlu0 %473 }
 0x3bd   :  { %v476_v22 = vsub.f32 %v467_v61, %v474_v21 }
 0x3bf   :  { %v479_v23 = vmul.f32 1.442695, %v476_v22 }
 0x3c1   :  { %1351 = vpow2.f32 %v479_v23 }
 0x3ce   :  { %v1766_v24 = vpop.eup %1351 }
 0x3cf   :  { %v484_v25 = vsel %vm468_vm11, %v1766_v24, 0.0 }
 0x3d0   :  { %485 = vadd.xlane.f32.xlu0 %v484_v25 }
 0x3e6   :  { %651 = vrot.lane.b32.xlu0 %v1569_v41, %s1401_s22 }
 0x3e8   :  { %v471_v26 = vpop.xlane.xlu1 %470 }
 0x3e9   :  { %v475_v27 = vsub.f32 %v466_v5, %v471_v26 }
 0x3ea   :  { %811 = vrot.lane.b32.xlu0 %v1566_v40, %s1403_s0 }
 0x3eb   :  { %v477_v29 = vmul.f32 1.442695, %v475_v27 }
 0x3ed   :  { %1353 = vpow2.f32 %v477_v29 }
 0x3ee   :  { %969 = vrot.lane.b32.xlu0 %v1566_v40, %s1397_s1 }
 0x3fa   :  { %v1354_v30 = vpop.eup %1353 }
 0x3fb   :  { %v481_v31 = vsel %vm468_vm11, %v1354_v30, 0.0 }
 0x3fc   :  { %482 = vadd.xlane.f32.xlu1 %v481_v31 }
 0x40d   :  { %653 = vrot.lane.b32.xlu1 %v1566_v40, %s1401_s22 }
 0x411   :  { %809 = vrot.lane.b32.xlu1 %v1569_v41, %s1403_s0 }
 0x415   :  { %967 = vrot.lane.b32.xlu1 %v1569_v41, %s1397_s1 }
 0x424   :  { %v633_v32 = vpop.xlane.xlu1 %632 }
 0x425   :  { %v637_v33 = vmax.f32 %v633_v32, 1e-30 }
 0x427   :  { %1355 = vrcp.f32 %v637_v33 }
 0x428   :  { %v636_v34 = vpop.xlane.xlu0 %635 }
 0x429   :  { %v638_v35 = vmax.f32 %v636_v34, 1e-30 }
 0x42b   :  { %1357 = vrcp.f32 %v638_v35 }
 0x42c   :  { %v793_v36 = vpop.xlane.xlu1 %792 }
 0x42d   :  { %v797_v37 = vmax.f32 %v793_v36, 1e-30 }
 0x42f   :  { %1359 = vrcp.f32 %v797_v37 }
 0x430   :  { %v796_v38 = vpop.xlane.xlu0 %795 }
 0x431   :  { %v798_v39 = vmax.f32 %v796_v38, 1e-30 }
 0x433   :  { %1361 = vrcp.f32 %v798_v39 }
 0x434   :  { %v1356_v42 = vpop.eup %1355  ;;  %v951_v40 = vpop.xlane.xlu1 %950 }
 0x435   :  { %v955_v43 = vmax.f32 %v951_v40, 1e-30  ;;  %v641_v44 = vmul.f32 %v1356_v42, %v1728_v52 }
 0x437   :  { %1363 = vrcp.f32 %v955_v43  ;;  %645 = vrot.lane.b32.xlu1 %v641_v44, %s1400_s6 }
 0x438   :  { %v1358_v41 = vpop.eup %1357  ;;  %v954_v45 = vpop.xlane.xlu0 %953 }
 0x439   :  { %v956_v46 = vmax.f32 %v954_v45, 1e-30  ;;  %v642_v49 = vmul.f32 %v1358_v41, %v1733_v56 }
 0x43b   :  { %1365 = vrcp.f32 %v956_v46  ;;  %647 = vrot.lane.b32.xlu1 %v642_v49, %s1400_s6 }
 0x43c   :  { %v1360_v16 = vpop.eup %1359 }
 0x43d   :  { %v801_v50 = vmul.f32 %v1360_v16, %v1738_v59 }
 0x43f   :  { %805 = vrot.lane.b32.xlu0 %v801_v50, %s1401_s22 }
 0x440   :  { %v1362_v14 = vpop.eup %1361 }
 0x441   :  { %v802_v18 = vmul.f32 %v1362_v14, %v1743_v48 }
 0x443   :  { %807 = vrot.lane.b32.xlu1 %v802_v18, %s1401_s22 }
 0x444   :  { %v1364_v51 = vpop.eup %1363 }
 0x445   :  { %v959_v52 = vmul.f32 %v1364_v51, %v1748_v63 }
 0x447   :  { %963 = vrot.lane.b32.xlu0 %v959_v52, %s1402_s23 }
 0x448   :  { %v1366_v53 = vpop.eup %1365 }
 0x449   :  { %v960_v54 = vmul.f32 %v1366_v53, %v1752_v0 }
 0x44b   :  { %965 = vrot.lane.b32.xlu1 %v960_v54, %s1402_s23 }
 0x459   :  { %v486_v55 = vpop.xlane.xlu0 %485 }
 0x45a   :  { %v488_v56 = vmax.f32 %v486_v55, 1e-30 }
 0x45c   :  { %1367 = vrcp.f32 %v488_v56 }
 0x45d   :  { %v652_v48 = vpop.permute.xlu0 %651 }
 0x461   :  { %v812_v0 = vpop.permute.xlu0 %811 }
 0x465   :  { %v970_v3 = vpop.permute.xlu0 %969 }
 0x469   :  { %v1368_v60 = vpop.eup %1367 }
 0x46a   :  { %v492_v63 = vmul.f32 %v1368_v60, %v1766_v24 }
 0x485   :  { %v483_v57 = vpop.xlane.xlu1 %482 }
 0x486   :  { %v487_v58 = vmax.f32 %v483_v57, 1e-30 }
 0x488   :  { %1369 = vrcp.f32 %v487_v58 }
 0x489   :  { %v654_v59 = vpop.permute.xlu1 %653 }
 0x48a   :  { %1296 = vmatprep.subr.mxu0 %v654_v59 }
 0x48d   :  { %v810_v20 = vpop.permute.xlu1 %809 }
 0x491   :  { %v968_v1 = vpop.permute.xlu1 %967 }
 0x495   :  { %v1370_v61 = vpop.eup %1369 }
 0x496   :  { %v491_v62 = vmul.f32 %v1370_v61, %v1354_v30 }
 0x498   :  { %1293 = vmatprep.mubr.msk.f32.mxu0 %vm468_vm11, %v491_v62 }
 0x499   :  { %1294 = vmatmul.mubr.msk.f32.vlgmr.msra.gmra.mxu0 %vm468_vm11, %v492_v63 }
 0x49a   :  { %1297 = vmatpush3.msra.mxu0 %v654_v59 }
 0x49b   :  { %1298 = vmatprep.subr.mxu0 %v652_v48 }
 0x49c   :  { %1299 = vmatpush3.msra.mxu0 %v652_v48 }
 0x49d   :  { %1303 = vmatprep.subr.mxu0 %v812_v0 }
 0x4a9   :  { %v646_v2 = vpop.permute.xlu1 %645 }
 0x4aa   :  { %1300 = vmatprep.mubr.msk.f32.mxu0 %vm468_vm11, %v646_v2 }
 0x4ad   :  { %v648_v4 = vpop.permute.xlu1 %647 }
 0x4ae   :  { %1301 = vmatmul.mubr.msk.f32.vlgmr.msra.gmra.mxu0 %vm468_vm11, %v648_v4 }
 0x4af   :  { %1304 = vmatpush3.msra.mxu0 %v812_v0 }
 0x4b0   :  { %1305 = vmatprep.subr.mxu0 %v810_v20 }
 0x4b1   :  { %1306 = vmatpush3.msra.mxu0 %v810_v20  ;;  %v806_v5 = vpop.permute.xlu0 %805 }
 0x4b2   :  { %1310 = vmatprep.subr.mxu0 %v970_v3  ;;  %1307 = vmatprep.mubr.msk.f32.mxu0 %vm468_vm11, %v806_v5 }
 0x4b5   :  { %v808_v6 = vpop.permute.xlu1 %807 }
 0x4b6   :  { %1308 = vmatmul.mubr.msk.f32.vlgmr.msra.gmra.mxu0 %vm468_vm11, %v808_v6 }
 0x4b7   :  { %1311 = vmatpush3.msra.mxu0 %v970_v3 }
 0x4b8   :  { %1312 = vmatprep.subr.mxu0 %v968_v1 }
 0x4b9   :  { %1313 = vmatpush3.msra.mxu0 %v968_v1  ;;  %v964_v7 = vpop.permute.xlu0 %963 }
 0x4ba   :  { %1314 = vmatprep.mubr.msk.f32.mxu0 %vm468_vm11, %v964_v7 }
 0x4bd   :  { %v966_v8 = vpop.permute.xlu1 %965 }
 0x4be   :  { %1315 = vmatmul.mubr.msk.f32.vlgmr.msra.gmra.mxu0 %vm468_vm11, %v966_v8 }
 0x559   :  { %v1295_v9 = vpop.f32.mrf.mxu0 }
 0x55b   :  { %v565_v10 = vpop.f32.mrf.mxu0 }
 0x56e   :  { %v1302_v11 = vpop.f32.mrf.mxu0 }
 0x56f   :  { %1056 = vrot.lane.b32.xlu1 %v1302_v11, %s1397_s1 }
 0x570   :  { %v727_v47 = vpop.f32.mrf.mxu0 }
 0x571   :  { %1054 = vrot.lane.b32.xlu0 %v727_v47, %s1397_s1 }
 0x576   :  { %v1309_v28 = vpop.f32.mrf.mxu0 }
 0x577   :  { %1064 = vrot.lane.b32.xlu1 %v1309_v28, %s1403_s0 }
 0x578   :  { %v885_v12 = vpop.f32.mrf.mxu0 }
 0x579   :  { %1062 = vrot.lane.b32.xlu0 %v885_v12, %s1403_s0 }
 0x57e   :  { %v1316_v19 = vpop.f32.mrf.mxu0 }
 0x57f   :  { %1072 = vrot.lane.b32.xlu1 %v1316_v19, %s1401_s22 }
 0x580   :  { %v1043_v13 = vpop.f32.mrf.mxu0 }
 0x581   :  { %1070 = vrot.lane.b32.xlu0 %v1043_v13, %s1401_s22 }
 0x5e1   :  { %v1057_v15 = vpop.permute.xlu1 %1056 }
 0x5e2   :  { %v1077_v23 = vsel %vm33_vm0, %v1295_v9, %v1057_v15 }
 0x5e3   :  { %v1055_v17 = vpop.permute.xlu0 %1054 }
 0x5e4   :  { %v1076_v26 = vsel %vm33_vm0, %v565_v10, %v1055_v17 }
 0x5e9   :  { %v1065_v21 = vpop.permute.xlu1 %1064 }
 0x5ea   :  { %v1080_v24 = vsel %vm1078_vm13, %v1077_v23, %v1065_v21 }
 0x5eb   :  { %v1063_v22 = vpop.permute.xlu0 %1062 }
 0x5ec   :  { %v1079_v29 = vsel %vm1078_vm13, %v1076_v26, %v1063_v22 }
 0x5f1   :  { %v1073_v25 = vpop.permute.xlu1 %1072 }
 0x5f2   :  { %v1083_v27 = vsel %vm1081_vm14, %v1080_v24, %v1073_v25 }
 0x5f3   :  { %1085 = vst [vmem:[#allocation2 + $0x8] sm:$0xff] %v1083_v27  ;;  %v1071_v30 = vpop.permute.xlu0 %1070 }
 0x5f4   :  { %v1082_v31 = vsel %vm1081_vm14, %v1079_v29, %v1071_v30 }
 0x5f5   :  { %1084 = vst [vmem:[#allocation2] sm:$0xff] %v1082_v31 }
 0x5f6   :  { %1382 = shalt.err (!%p1379_p4)
}
 0x5f7   :  { %s1405_s3 = smov 128   ;;  %s1406_s27 = smov 8  }
 0x5f8   :  { %1097 = dma.vmem_to_hbm [thread:$0]  %s1092_s25, 256, %s1822_s7, [#allocation3], %s1405_s3, %s1405_s3, %s1406_s27  }
 0x5f9   :  { %1391 = dma.done.wait [#allocation3], 256  }
 0x5fa   :  { %1392 = vsyncadd [#allocation3], 4294967040 }
 0x5fb   :  { %1101 = vsyncpa [#allocation3], 1 }

</bundles_post_ra>
